<compile_context>
chip_gen: v7x
topology: tpu7x:2x2x1
jax: 0.10.0
libtpu: 0.0.40
codegen_flags: <defaults>
</compile_context>

<pallas_src>
import math

import jax
import jax.numpy as jnp
from jax.experimental import pallas as pl
from jax.experimental.pallas import tpu as pltpu

# ---------------- model config (small, consistent with BertConfig fields) ----
B = 2            # batch
S = 8            # sequence length
H = 32           # hidden_size
NH = 4           # num_attention_heads
DH = H // NH     # attention_head_size
BH = B * NH      # fused (batch, head) dim used inside the kernel
EPS = 1e-12
SCALE = 1.0 / math.sqrt(DH)


def _layer_norm(v, gamma, beta):
    # TF-style LayerNorm (biased variance), identical to BertLayerNorm.forward
    u = jnp.mean(v, axis=-1, keepdims=True)
    s = jnp.mean((v - u) ** 2, axis=-1, keepdims=True)
    return gamma * ((v - u) * jax.lax.rsqrt(s + EPS)) + beta


def bert_attention_kernel(x_ref, mask_ref, wqkv_ref, bqkv_ref, wo_ref, bo_ref,
                          g_ref, be_ref, out_ref, probs_ref):
    x = x_ref[...]                                              # (B, S, H)

    # Single upfront relayout: tokens broadcast across heads -> (B*NH, S, H),
    # leading-dim merge only (minor (S, H) tile untouched).
    xb = jnp.broadcast_to(x[:, None, :, :], (B, NH, S, H)).reshape(BH, S, H)

    # Fused, head-batched QKV projection (SCALE pre-folded into q weight/bias
    # by the wrapper): one batched MXU dot_general, then 3 aligned lane slices.
    qkv = jnp.einsum('bsd,bdk->bsk', xb, wqkv_ref[...],
                     preferred_element_type=jnp.float32) + bqkv_ref[...]
    q = qkv[..., 0:DH]                                          # (B*NH, S, DH)
    k = qkv[..., DH:2 * DH]
    v = qkv[..., 2 * DH:3 * DH]

    # Attention scores batched over (batch, head): no per-head slices / .T.
    scores = jnp.einsum('bqd,bkd->bqk', q, k,
                        preferred_element_type=jnp.float32)     # (B*NH, S, S)

    # Additive key mask, built/broadcast once for the whole stack.
    m = mask_ref[...]                                           # (B, S)
    mb = jnp.broadcast_to(m[:, None, None, :], (B, NH, 1, S)).reshape(BH, 1, S)
    scores = scores + mb

    # One softmax over all heads / batches.
    scores = scores - jnp.max(scores, axis=-1, keepdims=True)
    e = jnp.exp(scores)
    denom = jnp.sum(e, axis=-1, keepdims=True)
    probs = e * pl.reciprocal(denom, approx=False)              # exact (probs atol 1e-5)

    # Store attention matrices in the computed layout; wrapper reshapes.
    probs_ref[...] = probs                                      # (B*NH, S, S)

    # Context and per-head-folded output projection, both as batched dots,
    # then a cheap major-axis head-sum (no lane-axis concatenate).
    ctx = jnp.einsum('bqk,bkd->bqd', probs, v,
                     preferred_element_type=jnp.float32)        # (B*NH, S, DH)
    proj = jnp.einsum('bsd,bdo->bso', ctx, wo_ref[...],
                      preferred_element_type=jnp.float32)       # (B*NH, S, H)
    attn = proj.reshape(B, NH, S, H).sum(axis=1) + bo_ref[...]  # (B, S, H)

    # BertSelfOutput: residual + LayerNorm (dropout = identity in eval).
    out_ref[...] = _layer_norm(attn + x, g_ref[...], be_ref[...])


def bert_attention(x, mask, params):
    """x: (B, S, H) f32, mask: (B, 1, S) additive f32.
    Returns (attention_output (B,S,H), attention_probs (B,NH,S,S))."""
    wq, bq, wk, bk, wv, bv, wo, bo, g, be = params

    # One-time parameter fusion / relayout (per-head, batch-tiled) in the
    # wrapper so the kernel never slices heads out of the lane axis.
    def heads(w):                       # (H, H) -> (NH, H, DH)
        return jnp.transpose(w.reshape(H, NH, DH), (1, 0, 2))

    wqkv = jnp.concatenate([heads(wq) * SCALE, heads(wk), heads(wv)], axis=2)
    wqkv_bh = jnp.tile(wqkv, (B, 1, 1))                         # (B*NH, H, 3*DH)

    bqkv = jnp.concatenate([bq[0].reshape(NH, DH) * SCALE,
                            bk[0].reshape(NH, DH),
                            bv[0].reshape(NH, DH)], axis=1)     # (NH, 3*DH)
    bqkv_bh = jnp.tile(bqkv, (B, 1))[:, None, :]                # (B*NH, 1, 3*DH)

    wo_bh = jnp.tile(wo.reshape(NH, DH, H), (B, 1, 1))          # (B*NH, DH, H)

    mask2 = mask.reshape(B, S)                                  # plain 2-D mask

    in_specs = [
        pl.BlockSpec((B, S, H), lambda i: (0, 0, 0)),           # hidden_states
        pl.BlockSpec((B, S), lambda i: (0, 0)),                 # attention_mask
        pl.BlockSpec((BH, H, 3 * DH), lambda i: (0, 0, 0)),     # fused qkv weight
        pl.BlockSpec((BH, 1, 3 * DH), lambda i: (0, 0, 0)),     # fused qkv bias
        pl.BlockSpec((BH, DH, H), lambda i: (0, 0, 0)),         # per-head output weight
        pl.BlockSpec((1, H), lambda i: (0, 0)),                 # output dense bias
        pl.BlockSpec((1, H), lambda i: (0, 0)),                 # LayerNorm gamma
        pl.BlockSpec((1, H), lambda i: (0, 0)),                 # LayerNorm beta
    ]
    out_specs = (
        pl.BlockSpec((B, S, H), lambda i: (0, 0, 0)),
        pl.BlockSpec((BH, S, S), lambda i: (0, 0, 0)),
    )
    out_shape = (
        jax.ShapeDtypeStruct((B, S, H), jnp.float32),
        jax.ShapeDtypeStruct((BH, S, S), jnp.float32),
    )

    out, probs = pl.pallas_call(
        bert_attention_kernel,
        grid=(1,),                                  # single step: grid overhead ≈ compute here
        in_specs=in_specs,
        out_specs=out_specs,
        out_shape=out_shape,
        compiler_params=pltpu.CompilerParams(dimension_semantics=("arbitrary",)),
    )(x, mask2, wqkv_bh, bqkv_bh, wo_bh, bo, g, be)
    return out, probs.reshape(B, NH, S, S)


# ---------------- pure-JAX reference for a numerical sanity check -----------
def bert_attention_ref(x, mask, params):
    wq, bq, wk, bk, wv, bv, wo, bo, g, be = params

    def ln(v_, gg, bb):
        u = jnp.mean(v_, -1, keepdims=True)
        s = jnp.mean((v_ - u) ** 2, -1, keepdims=True)
        return gg * ((v_ - u) / jnp.sqrt(s + EPS)) + bb

    q = (x @ wq + bq[0]).reshape(B, S, NH, DH).transpose(0, 2, 1, 3)
    k = (x @ wk + bk[0]).reshape(B, S, NH, DH).transpose(0, 2, 1, 3)
    v = (x @ wv + bv[0]).reshape(B, S, NH, DH).transpose(0, 2, 1, 3)
    sc = jnp.einsum('bhqd,bhkd->bhqk', q, k) * SCALE + mask[:, None, :, :]
    p = jax.nn.softmax(sc, axis=-1)
    ctx = jnp.einsum('bhqk,bhkd->bhqd', p, v).transpose(0, 2, 1, 3).reshape(B, S, H)
    out = ln(ctx @ wo + bo[0] + x, g[0], be[0])
    return out, p


if __name__ == "__main__":
    key = jax.random.PRNGKey(0)
    keys = jax.random.split(key, 8)

    def init_w(k, shape, fan_in):
        return jax.random.normal(k, shape, jnp.float32) * (1.0 / math.sqrt(fan_in))

    # deterministic synthetic parameters (nn.Linear-like, stored (in, out))
    wq = init_w(keys[0], (H, H), H); bq = jnp.zeros((1, H), jnp.float32) + 0.01
    wk = init_w(keys[1], (H, H), H); bk = jnp.zeros((1, H), jnp.float32) - 0.01
    wv = init_w(keys[2], (H, H), H); bv = jnp.zeros((1, H), jnp.float32) + 0.02
    wo = init_w(keys[3], (H, H), H); bo = jnp.zeros((1, H), jnp.float32)
    g1 = jnp.ones((1, H), jnp.float32); be1 = jnp.zeros((1, H), jnp.float32)
    params = (wq, bq, wk, bk, wv, bv, wo, bo, g1, be1)

    x = jax.random.normal(keys[4], (B, S, H), jnp.float32)
    # additive attention mask: last 2 key positions of batch 1 are masked out
    valid = jnp.ones((B, 1, S), jnp.float32).at[1, 0, -2:].set(0.0)
    mask = (1.0 - valid) * -10000.0

    out, probs = bert_attention(x, mask, params)
    out = jax.block_until_ready(out)
    probs = jax.block_until_ready(probs)

    out_ref, probs_ref = bert_attention_ref(x, mask, params)
    assert jnp.allclose(out, out_ref, atol=1e-4, rtol=1e-4), "attention output mismatch"
    assert jnp.allclose(probs, probs_ref, atol=1e-5, rtol=1e-4), "attention probs mismatch"

    print("KERNEL_OK")
</pallas_src>

<mosaic_0001>
module attributes {stable_mosaic.version = 11 : i64} {
  func.func @bert_attention_kernel(%arg0: i32, %arg1: memref<2x8x32xf32, #tpu.memory_space<vmem>>, %arg2: memref<2x8xf32, #tpu.memory_space<vmem>>, %arg3: memref<8x32x24xf32, #tpu.memory_space<vmem>>, %arg4: memref<8x1x24xf32, #tpu.memory_space<vmem>>, %arg5: memref<8x8x32xf32, #tpu.memory_space<vmem>>, %arg6: memref<1x32xf32, #tpu.memory_space<vmem>>, %arg7: memref<1x32xf32, #tpu.memory_space<vmem>>, %arg8: memref<1x32xf32, #tpu.memory_space<vmem>>, %arg9: memref<2x8x32xf32, #tpu.memory_space<vmem>>, %arg10: memref<8x8x8xf32, #tpu.memory_space<vmem>>) attributes {dimension_semantics = [#tpu.dimension_semantics<arbitrary>], iteration_bounds = array<i64: 1>, scalar_prefetch = 0 : i64, scratch_operands = 0 : i64, tpu.core_type = #tpu.core_type<tc>, window_params = [{pipeline_mode = #tpu.pipeline_mode<synchronous>, transform_indices = @transform_0, window_bounds = array<i64: 2, 8, 32>}, {pipeline_mode = #tpu.pipeline_mode<synchronous>, transform_indices = @transform_1, window_bounds = array<i64: 2, 8>}, {pipeline_mode = #tpu.pipeline_mode<synchronous>, transform_indices = @transform_2, window_bounds = array<i64: 8, 32, 24>}, {pipeline_mode = #tpu.pipeline_mode<synchronous>, transform_indices = @transform_3, window_bounds = array<i64: 8, 1, 24>}, {pipeline_mode = #tpu.pipeline_mode<synchronous>, transform_indices = @transform_4, window_bounds = array<i64: 8, 8, 32>}, {pipeline_mode = #tpu.pipeline_mode<synchronous>, transform_indices = @transform_5, window_bounds = array<i64: 1, 32>}, {pipeline_mode = #tpu.pipeline_mode<synchronous>, transform_indices = @transform_6, window_bounds = array<i64: 1, 32>}, {pipeline_mode = #tpu.pipeline_mode<synchronous>, transform_indices = @transform_7, window_bounds = array<i64: 1, 32>}, {pipeline_mode = #tpu.pipeline_mode<synchronous>, transform_indices = @transform_8, window_bounds = array<i64: 2, 8, 32>}, {pipeline_mode = #tpu.pipeline_mode<synchronous>, transform_indices = @transform_9, window_bounds = array<i64: 8, 8, 8>}]} {
    %c0 = arith.constant 0 : index
    %c0_0 = arith.constant 0 : index
    %c0_1 = arith.constant 0 : index
    %0 = vector.load %arg1[%c0, %c0_0, %c0_1] : memref<2x8x32xf32, #tpu.memory_space<vmem>>, vector<2x8x32xf32>
    %1 = vector.shape_cast %0 : vector<2x8x32xf32> to vector<2x1x8x32xf32>
    %2 = vector.shape_cast %1 : vector<2x1x8x32xf32> to vector<2x1x8x32xf32>
    %3 = vector.broadcast %2 : vector<2x1x8x32xf32> to vector<2x4x8x32xf32>
    %4 = vector.shape_cast %3 : vector<2x4x8x32xf32> to vector<8x8x32xf32>
    %c0_2 = arith.constant 0 : index
    %c0_3 = arith.constant 0 : index
    %c0_4 = arith.constant 0 : index
    %5 = vector.load %arg3[%c0_2, %c0_3, %c0_4] : memref<8x32x24xf32, #tpu.memory_space<vmem>>, vector<8x32x24xf32>
    "tpu.trace_start"() <{level = 10 : i32, message = "bsd,bdk->bsk"}> : () -> ()
    %cst = arith.constant dense<0.000000e+00> : vector<8x8x24xf32>
    %6 = tpu.matmul %4, %5, %cst {dimension_numbers = #tpu.dot_dimension_numbers<[2], [1], [1], [2], [0, 0, 0, 1, 1, 2], [0], [0]>} : vector<8x8x32xf32>, vector<8x32x24xf32>, vector<8x8x24xf32> -> vector<8x8x24xf32>
    "tpu.trace_stop"() : () -> ()
    %c0_5 = arith.constant 0 : index
    %c0_6 = arith.constant 0 : index
    %c0_7 = arith.constant 0 : index
    %7 = vector.load %arg4[%c0_5, %c0_6, %c0_7] : memref<8x1x24xf32, #tpu.memory_space<vmem>>, vector<8x1x24xf32>
    %8 = vector.broadcast %7 : vector<8x1x24xf32> to vector<8x8x24xf32>
    %9 = arith.addf %6, %8 : vector<8x8x24xf32>
    %10 = vector.extract_strided_slice %9 {offsets = [0, 0, 0], sizes = [8, 8, 8], strides = [1, 1, 1]} : vector<8x8x24xf32> to vector<8x8x8xf32>
    %11 = vector.extract_strided_slice %9 {offsets = [0, 0, 8], sizes = [8, 8, 8], strides = [1, 1, 1]} : vector<8x8x24xf32> to vector<8x8x8xf32>
    %12 = vector.extract_strided_slice %9 {offsets = [0, 0, 16], sizes = [8, 8, 8], strides = [1, 1, 1]} : vector<8x8x24xf32> to vector<8x8x8xf32>
    "tpu.trace_start"() <{level = 10 : i32, message = "bqd,bkd->bqk"}> : () -> ()
    %cst_8 = arith.constant dense<0.000000e+00> : vector<8x8x8xf32>
    %13 = tpu.matmul %10, %11, %cst_8 {dimension_numbers = #tpu.dot_dimension_numbers<[2], [2], [1], [1], [0, 0, 0, 1, 1, 1], [0], [0]>} : vector<8x8x8xf32>, vector<8x8x8xf32>, vector<8x8x8xf32> -> vector<8x8x8xf32>
    "tpu.trace_stop"() : () -> ()
    %c0_9 = arith.constant 0 : index
    %c0_10 = arith.constant 0 : index
    %14 = vector.load %arg2[%c0_9, %c0_10] : memref<2x8xf32, #tpu.memory_space<vmem>>, vector<2x8xf32>
    %15 = vector.shape_cast %14 : vector<2x8xf32> to vector<2x1x1x8xf32>
    %16 = vector.shape_cast %15 : vector<2x1x1x8xf32> to vector<2x1x1x8xf32>
    %17 = vector.broadcast %16 : vector<2x1x1x8xf32> to vector<2x4x1x8xf32>
    %18 = vector.shape_cast %17 : vector<2x4x1x8xf32> to vector<8x1x8xf32>
    %19 = vector.broadcast %18 : vector<8x1x8xf32> to vector<8x8x8xf32>
    %20 = arith.addf %13, %19 : vector<8x8x8xf32>
    %cst_11 = arith.constant dense<0xFF800000> : vector<8x8xf32>
    %21 = vector.multi_reduction <maximumf>, %20, %cst_11 [2] : vector<8x8x8xf32> to vector<8x8xf32>
    %22 = vector.shape_cast %21 : vector<8x8xf32> to vector<8x8x1xf32>
    %23 = vector.broadcast %22 : vector<8x8x1xf32> to vector<8x8x8xf32>
    %24 = arith.subf %20, %23 : vector<8x8x8xf32>
    %25 = math.exp %24 : vector<8x8x8xf32>
    %cst_12 = arith.constant dense<0.000000e+00> : vector<8x8xf32>
    %26 = vector.multi_reduction <add>, %25, %cst_12 [2] : vector<8x8x8xf32> to vector<8x8xf32>
    %27 = vector.shape_cast %26 : vector<8x8xf32> to vector<8x8x1xf32>
    %28 = tpu.reciprocal %27 : vector<8x8x1xf32> -> vector<8x8x1xf32>
    %29 = vector.broadcast %28 : vector<8x8x1xf32> to vector<8x8x8xf32>
    %30 = arith.mulf %25, %29 : vector<8x8x8xf32>
    %c0_13 = arith.constant 0 : index
    %c0_14 = arith.constant 0 : index
    %c0_15 = arith.constant 0 : index
    %31 = vector.load %arg10[%c0_13, %c0_14, %c0_15] : memref<8x8x8xf32, #tpu.memory_space<vmem>>, vector<8x8x8xf32>
    tpu.vector_store %arg10[%c0_13, %c0_14, %c0_15], %30 {strides = array<i32>} : memref<8x8x8xf32, #tpu.memory_space<vmem>>, vector<8x8x8xf32>,
    "tpu.trace_start"() <{level = 10 : i32, message = "bqk,bkd->bqd"}> : () -> ()
    %cst_16 = arith.constant dense<0.000000e+00> : vector<8x8x8xf32>
    %32 = tpu.matmul %30, %12, %cst_16 {dimension_numbers = #tpu.dot_dimension_numbers<[2], [1], [1], [2], [0, 0, 0, 1, 1, 2], [0], [0]>} : vector<8x8x8xf32>, vector<8x8x8xf32>, vector<8x8x8xf32> -> vector<8x8x8xf32>
    "tpu.trace_stop"() : () -> ()
    %c0_17 = arith.constant 0 : index
    %c0_18 = arith.constant 0 : index
    %c0_19 = arith.constant 0 : index
    %33 = vector.load %arg5[%c0_17, %c0_18, %c0_19] : memref<8x8x32xf32, #tpu.memory_space<vmem>>, vector<8x8x32xf32>
    "tpu.trace_start"() <{level = 10 : i32, message = "bsd,bdo->bso"}> : () -> ()
    %cst_20 = arith.constant dense<0.000000e+00> : vector<8x8x32xf32>
    %34 = tpu.matmul %32, %33, %cst_20 {dimension_numbers = #tpu.dot_dimension_numbers<[2], [1], [1], [2], [0, 0, 0, 1, 1, 2], [0], [0]>} : vector<8x8x8xf32>, vector<8x8x32xf32>, vector<8x8x32xf32> -> vector<8x8x32xf32>
    "tpu.trace_stop"() : () -> ()
    %35 = vector.shape_cast %34 : vector<8x8x32xf32> to vector<2x4x8x32xf32>
    %cst_21 = arith.constant dense<0.000000e+00> : vector<2x8x32xf32>
    %36 = vector.multi_reduction <add>, %35, %cst_21 [1] : vector<2x4x8x32xf32> to vector<2x8x32xf32>
    %c0_22 = arith.constant 0 : index
    %c0_23 = arith.constant 0 : index
    %37 = vector.load %arg6[%c0_22, %c0_23] : memref<1x32xf32, #tpu.memory_space<vmem>>, vector<1x32xf32>
    %38 = vector.shape_cast %37 : vector<1x32xf32> to vector<1x1x32xf32>
    %39 = vector.broadcast %38 : vector<1x1x32xf32> to vector<2x8x32xf32>
    %40 = arith.addf %36, %39 : vector<2x8x32xf32>
    %41 = arith.addf %40, %0 : vector<2x8x32xf32>
    %c0_24 = arith.constant 0 : index
    %c0_25 = arith.constant 0 : index
    %42 = vector.load %arg7[%c0_24, %c0_25] : memref<1x32xf32, #tpu.memory_space<vmem>>, vector<1x32xf32>
    %c0_26 = arith.constant 0 : index
    %c0_27 = arith.constant 0 : index
    %43 = vector.load %arg8[%c0_26, %c0_27] : memref<1x32xf32, #tpu.memory_space<vmem>>, vector<1x32xf32>
    %cst_28 = arith.constant dense<0.000000e+00> : vector<2x8xf32>
    %44 = vector.multi_reduction <add>, %41, %cst_28 [2] : vector<2x8x32xf32> to vector<2x8xf32>
    %45 = vector.shape_cast %44 : vector<2x8xf32> to vector<2x8x1xf32>
    %cst_29 = arith.constant 3.200000e+01 : f32
    %46 = vector.broadcast %cst_29 : f32 to vector<2x8x1xf32>
    %47 = arith.divf %45, %46 : vector<2x8x1xf32>
    %48 = vector.broadcast %47 : vector<2x8x1xf32> to vector<2x8x32xf32>
    %49 = arith.subf %41, %48 : vector<2x8x32xf32>
    %50 = arith.mulf %49, %49 : vector<2x8x32xf32>
    %cst_30 = arith.constant dense<0.000000e+00> : vector<2x8xf32>
    %51 = vector.multi_reduction <add>, %50, %cst_30 [2] : vector<2x8x32xf32> to vector<2x8xf32>
    %52 = vector.shape_cast %51 : vector<2x8xf32> to vector<2x8x1xf32>
    %cst_31 = arith.constant 3.200000e+01 : f32
    %53 = vector.broadcast %cst_31 : f32 to vector<2x8x1xf32>
    %54 = arith.divf %52, %53 : vector<2x8x1xf32>
    %55 = vector.broadcast %47 : vector<2x8x1xf32> to vector<2x8x32xf32>
    %56 = arith.subf %41, %55 : vector<2x8x32xf32>
    %cst_32 = arith.constant 9.99999996E-13 : f32
    %57 = vector.broadcast %cst_32 : f32 to vector<2x8x1xf32>
    %58 = arith.addf %54, %57 : vector<2x8x1xf32>
    %59 = math.rsqrt %58 : vector<2x8x1xf32>
    %60 = vector.broadcast %59 : vector<2x8x1xf32> to vector<2x8x32xf32>
    %61 = arith.mulf %56, %60 : vector<2x8x32xf32>
    %62 = vector.shape_cast %42 : vector<1x32xf32> to vector<1x1x32xf32>
    %63 = vector.broadcast %62 : vector<1x1x32xf32> to vector<2x8x32xf32>
    %64 = arith.mulf %63, %61 : vector<2x8x32xf32>
    %65 = vector.shape_cast %43 : vector<1x32xf32> to vector<1x1x32xf32>
    %66 = vector.broadcast %65 : vector<1x1x32xf32> to vector<2x8x32xf32>
    %67 = arith.addf %64, %66 : vector<2x8x32xf32>
    %c0_33 = arith.constant 0 : index
    %c0_34 = arith.constant 0 : index
    %c0_35 = arith.constant 0 : index
    %68 = vector.load %arg9[%c0_33, %c0_34, %c0_35] : memref<2x8x32xf32, #tpu.memory_space<vmem>>, vector<2x8x32xf32>
    tpu.vector_store %arg9[%c0_33, %c0_34, %c0_35], %67 {strides = array<i32>} : memref<2x8x32xf32, #tpu.memory_space<vmem>>, vector<2x8x32xf32>,
    return
  }
  func.func @transform_0(%arg0: i32) -> (i32, i32, i32) {
    %c0_i32 = arith.constant 0 : i32
    %c0_i32_0 = arith.constant 0 : i32
    %c0_i32_1 = arith.constant 0 : i32
    %c0_i32_2 = arith.constant 0 : i32
    return %c0_i32, %c0_i32_0, %c0_i32_1 : i32, i32, i32
  }
  func.func @transform_1(%arg0: i32) -> (i32, i32) {
    %c0_i32 = arith.constant 0 : i32
    %c0_i32_0 = arith.constant 0 : i32
    %c0_i32_1 = arith.constant 0 : i32
    return %c0_i32, %c0_i32_0 : i32, i32
  }
  func.func @transform_2(%arg0: i32) -> (i32, i32, i32) {
    %c0_i32 = arith.constant 0 : i32
    %c0_i32_0 = arith.constant 0 : i32
    %c0_i32_1 = arith.constant 0 : i32
    %c0_i32_2 = arith.constant 0 : i32
    return %c0_i32, %c0_i32_0, %c0_i32_1 : i32, i32, i32
  }
  func.func @transform_3(%arg0: i32) -> (i32, i32, i32) {
    %c0_i32 = arith.constant 0 : i32
    %c0_i32_0 = arith.constant 0 : i32
    %c0_i32_1 = arith.constant 0 : i32
    %c0_i32_2 = arith.constant 0 : i32
    return %c0_i32, %c0_i32_0, %c0_i32_1 : i32, i32, i32
  }
  func.func @transform_4(%arg0: i32) -> (i32, i32, i32) {
    %c0_i32 = arith.constant 0 : i32
    %c0_i32_0 = arith.constant 0 : i32
    %c0_i32_1 = arith.constant 0 : i32
    %c0_i32_2 = arith.constant 0 : i32
    return %c0_i32, %c0_i32_0, %c0_i32_1 : i32, i32, i32
  }
  func.func @transform_5(%arg0: i32) -> (i32, i32) {
    %c0_i32 = arith.constant 0 : i32
    %c0_i32_0 = arith.constant 0 : i32
    %c0_i32_1 = arith.constant 0 : i32
    return %c0_i32, %c0_i32_0 : i32, i32
  }
  func.func @transform_6(%arg0: i32) -> (i32, i32) {
    %c0_i32 = arith.constant 0 : i32
    %c0_i32_0 = arith.constant 0 : i32
    %c0_i32_1 = arith.constant 0 : i32
    return %c0_i32, %c0_i32_0 : i32, i32
  }
  func.func @transform_7(%arg0: i32) -> (i32, i32) {
    %c0_i32 = arith.constant 0 : i32
    %c0_i32_0 = arith.constant 0 : i32
    %c0_i32_1 = arith.constant 0 : i32
    return %c0_i32, %c0_i32_0 : i32, i32
  }
  func.func @transform_8(%arg0: i32) -> (i32, i32, i32) {
    %c0_i32 = arith.constant 0 : i32
    %c0_i32_0 = arith.constant 0 : i32
    %c0_i32_1 = arith.constant 0 : i32
    %c0_i32_2 = arith.constant 0 : i32
    return %c0_i32, %c0_i32_0, %c0_i32_1 : i32, i32, i32
  }
  func.func @transform_9(%arg0: i32) -> (i32, i32, i32) {
    %c0_i32 = arith.constant 0 : i32
    %c0_i32_0 = arith.constant 0 : i32
    %c0_i32_1 = arith.constant 0 : i32
    %c0_i32_2 = arith.constant 0 : i32
    return %c0_i32, %c0_i32_0, %c0_i32_1 : i32, i32, i32
  }
}

</mosaic_0001>

<bundles_post_ra>
// kernel: tpu_custom_call.1
= control target key start
LH: loop header
LB: loop body
LE: loop exit
PB: predicated region body
PF: predicated region fallthrough
CT: control target
= control target key end

     0   :  { %15 = vsyncpa [#allocation3], 0  ;;  %v3231_v3 = vmov 0.0|0.0   ;;  %vm3232_vm0 = vmmov 0   ;;  %v3233_v11 = vmov 0.0   ;;  %vm123_vm1 = vcmask 261120   ;;  %s3759_s0 = inlined_call_operand.vmem [shape: f32[2,8,32], index: 0, kind: input, shape index: {}]   ;;  %s3760_s1 = inlined_call_operand.vmem [shape: f32[2,8], index: 1, kind: input, shape index: {}]   ;;  %s3761_s2 = inlined_call_operand.vmem [shape: f32[8,32,24], index: 2, kind: input, shape index: {}]   ;;  %s3762_s3 = inlined_call_operand.vmem [shape: f32[8,1,24], index: 3, kind: input, shape index: {}]   ;;  %s3763_s4 = inlined_call_operand.vmem [shape: f32[8,8,32], index: 4, kind: input, shape index: {}]   ;;  %s3764_s5 = inlined_call_operand.vmem [shape: f32[1,32], index: 5, kind: input, shape index: {}]   ;;  %s3765_s6 = inlined_call_operand.vmem [shape: f32[1,32], index: 6, kind: input, shape index: {}]   ;;  %s3766_s7 = inlined_call_operand.vmem [shape: f32[1,32], index: 7, kind: input, shape index: {}]   ;;  %s3767_s8 = inlined_call_operand.hbm [shape: f32[2,8,32], index: 8, kind: output, shape index: {0}]   ;;  %s3768_s9 = inlined_call_operand.hbm [shape: f32[8,8,8], index: 9, kind: output, shape index: {1}]  }
   0x1   :  { %v35_v0 = vld [vmem:[%s3761_s2] sm:$0xff]  ;;  %v36_v1 = vld [vmem:[%s3761_s2 + $0x8] sm:$0xff]  ;;  %3089 = vmatprep.subr.bf16.mxu0 %v3231_v3  ;;  %3095 = vmatprep.subr.bf16.mxu1 %v3231_v3  ;;  %v37_v6 = vld [vmem:[%s3761_s2 + $0x10] sm:$0xff] }
   0x2   :  { %v39_v2 = vld [vmem:[%s3761_s2 + $0x20] sm:$0xff]  ;;  %v3090_v4 = vpack.c.bf16 %v36_v1, %v35_v0  ;;  %v40_v5 = vld [vmem:[%s3761_s2 + $0x28] sm:$0xff]  ;;  %v38_v7 = vld [vmem:[%s3761_s2 + $0x18] sm:$0xff]  ;;  %2889 = vmatprep.mubr.msk.f32.mxu0 %vm3232_vm0, %v3233_v11  ;;  %2900 = vmatprep.mubr.msk.f32.mxu1 %vm3232_vm0, %v3233_v11 }
   0x3   :  { %v3096_v8 = vpack.c.bf16 %v40_v5, %v39_v2  ;;  %v41_v9 = vld [vmem:[%s3761_s2 + $0x30] sm:$0xff]  ;;  %v42_v10 = vld [vmem:[%s3761_s2 + $0x38] sm:$0xff]  ;;  %v3093_v12 = vpack.c.bf16 %v38_v7, %v37_v6  ;;  %v43_v14 = vld [vmem:[%s3761_s2 + $0x40] sm:$0xff] }
   0x4   :  { %3091 = vmatpush3.bf16.msra.mxu0 %v3090_v4  ;;  %v3099_v13 = vpack.c.bf16 %v42_v10, %v41_v9  ;;  %v44_v15 = vld [vmem:[%s3761_s2 + $0x48] sm:$0xff]  ;;  %v47_v16 = vld [vmem:[%s3761_s2 + $0x60] sm:$0xff]  ;;  %v45_v21 = vld [vmem:[%s3761_s2 + $0x50] sm:$0xff] }
   0x5   :  { %3097 = vmatpush3.bf16.msra.mxu1 %v3096_v8  ;;  %3092 = vmatprep.subr.bf16.mxu0 %v3231_v3  ;;  %v48_v17 = vld [vmem:[%s3761_s2 + $0x68] sm:$0xff]  ;;  %v3338_v18 = vld [vmem:[%s3759_s0] sm:$0xff]  ;;  %v3102_v19 = vpack.c.bf16 %v44_v15, %v43_v14  ;;  %v46_v22 = vld [vmem:[%s3761_s2 + $0x58] sm:$0xff] }
   0x6   :  { %3098 = vmatprep.subr.bf16.mxu1 %v3231_v3  ;;  %v3108_v20 = vpack.c.bf16 %v48_v17, %v47_v16  ;;  %v49_v23 = vld [vmem:[%s3761_s2 + $0x70] sm:$0xff]  ;;  %v50_v24 = vld [vmem:[%s3761_s2 + $0x78] sm:$0xff]  ;;  %v3105_v25 = vpack.c.bf16 %v46_v22, %v45_v21 }
   0x8   :  { %3094 = vmatpush3.bf16.msra.mxu0 %v3093_v12 }
   0x9   :  { %3100 = vmatpush3.bf16.msra.mxu1 %v3099_v13  ;;  %3101 = vmatprep.subr.bf16.mxu0 %v3231_v3 }
   0xa   :  { %3107 = vmatprep.subr.bf16.mxu1 %v3231_v3 }
   0xb   :  { %2890 = vmatmul.mubr.msk.f32.vlgmr.msra.gmra.mrb[0].mxu0 %vm123_vm1, %v3338_v18 }
   0xc   :  { %2901 = vmatmul.mubr.msk.f32.vlgmr.msra.gmra.mrb[0].mxu1 %vm123_vm1, %v3338_v18  ;;  %3103 = vmatpush3.bf16.msra.mxu0 %v3102_v19 }
   0xd   :  { %16 = vsyncpa [#allocation5], 0  ;;  %3109 = vmatpush3.bf16.msra.mxu1 %v3108_v20  ;;  %3104 = vmatprep.subr.bf16.mxu0 %v3231_v3  ;;  %v3111_v26 = vpack.c.bf16 %v50_v24, %v49_v23  ;;  %v51_v27 = vld [vmem:[%s3761_s2 + $0x80] sm:$0xff]  ;;  %v52_v28 = vld [vmem:[%s3761_s2 + $0x88] sm:$0xff]  ;;  %s3234_s16 = smov 120   ;;  %vm727_vm2 = vcmask 64512  }
   0xe   :  { %3110 = vmatprep.subr.bf16.mxu1 %v3231_v3  ;;  %2911 = vmatprep.mubr.msk.f32.mxu0 %vm3232_vm0, %v3233_v11  ;;  %v55_v29 = vld [vmem:[%s3761_s2 + $0xa0] sm:$0xff]  ;;  %v56_v30 = vld [vmem:[%s3761_s2 + $0xa8] sm:$0xff]  ;;  %v3114_v31 = vpack.c.bf16 %v52_v28, %v51_v27  ;;  %v53_v33 = vld [vmem:[%s3761_s2 + $0x90] sm:$0xff] }
   0xf   :  { %2922 = vmatprep.mubr.msk.f32.mxu1 %vm3232_vm0, %v3233_v11  ;;  %v3120_v32 = vpack.c.bf16 %v56_v30, %v55_v29  ;;  %v54_v34 = vld [vmem:[%s3761_s2 + $0x98] sm:$0xff]  ;;  %v57_v35 = vld [vmem:[%s3761_s2 + $0xb0] sm:$0xff]  ;;  %v59_v39 = vld [vmem:[%s3761_s2 + $0xc0] sm:$0xff]  ;;  %v3235_v30 = vmov 1966171168  }
  0x10   :  { %3106 = vmatpush3.bf16.msra.mxu0 %v3105_v25  ;;  %v58_v36 = vld [vmem:[%s3761_s2 + $0xb8] sm:$0xff]  ;;  %v3117_v37 = vpack.c.bf16 %v54_v34, %v53_v33  ;;  %v60_v40 = vld [vmem:[%s3761_s2 + $0xc8] sm:$0xff]  ;;  %v63_v41 = vld [vmem:[%s3761_s2 + $0xe0] sm:$0xff] }
  0x11   :  { %3112 = vmatpush3.bf16.msra.mxu1 %v3111_v26  ;;  %3113 = vmatprep.subr.bf16.mxu0 %v3231_v3  ;;  %v3123_v38 = vpack.c.bf16 %v58_v36, %v57_v35  ;;  %v64_v42 = vld [vmem:[%s3761_s2 + $0xe8] sm:$0xff]  ;;  %v3126_v44 = vpack.c.bf16 %v60_v40, %v59_v39  ;;  %v61_v46 = vld [vmem:[%s3761_s2 + $0xd0] sm:$0xff]  ;;  %v62_v47 = vld [vmem:[%s3761_s2 + $0xd8] sm:$0xff] }
  0x12   :  { %3119 = vmatprep.subr.bf16.mxu1 %v3231_v3  ;;  %v3415_v43 = vld [vmem:[%s3759_s0 + $0x8] sm:$0xff]  ;;  %v3132_v45 = vpack.c.bf16 %v64_v42, %v63_v41  ;;  %v65_v48 = vld [vmem:[%s3761_s2 + $0xf0] sm:$0xff]  ;;  %v66_v49 = vld [vmem:[%s3761_s2 + $0xf8] sm:$0xff]  ;;  %v3129_v50 = vpack.c.bf16 %v62_v47, %v61_v46 }
  0x13   :  { %2912 = vmatmul.mubr.msk.f32.vlgmr.msra.gmra.mrb[2].mxu0 %vm123_vm1, %v3338_v18  ;;  %v3135_v51 = vpack.c.bf16 %v66_v49, %v65_v48  ;;  %v2741_v52 = vld [vmem:[%s3762_s3] ss:$0 sm:$0xff]  ;;  %v2742_v54 = vld [vmem:[%s3762_s3 + $0x1] ss:$0 sm:$0xff]  ;;  %v2743_v60 = vld [vmem:[%s3762_s3 + $0x2] ss:$0 sm:$0xff] }
  0x14   :  { %2923 = vmatmul.mubr.msk.f32.vlgmr.msra.gmra.mrb[2].mxu1 %vm123_vm1, %v3338_v18  ;;  %3115 = vmatpush3.bf16.msra.mxu0 %v3114_v31  ;;  %v2744_v62 = vld [vmem:[%s3762_s3 + $0x3] ss:$0 sm:$0xff]  ;;  %v2745_v4 = vld [vmem:[%s3762_s3 + $0x4] ss:$0 sm:$0xff]  ;;  %v2746_v5 = vld [vmem:[%s3762_s3 + $0x5] ss:$0 sm:$0xff]  ;;  %v701_v31 = vunpack.c.l.s4 %v3235_v30 }
  0x15   :  { %3121 = vmatpush3.bf16.msra.mxu1 %v3120_v32  ;;  %3116 = vmatprep.subr.bf16.mxu0 %v3231_v3  ;;  %v2747_v13 = vld [vmem:[%s3762_s3 + $0x6] ss:$0 sm:$0xff]  ;;  %v2748_v14 = vld [vmem:[%s3762_s3 + $0x7] ss:$0 sm:$0xff]  ;;  %v703_v32 = vlaneseq }
  0x16   :  { %3122 = vmatprep.subr.bf16.mxu1 %v3231_v3  ;;  %2933 = vmatprep.mubr.msk.f32.mxu0 %vm3232_vm0, %v3233_v11  ;;  %v702_v33 = vunpack.c.0.s8 %v701_v31  ;;  %v2757_v36 = vld.sshfl [vmem:[%s3760_s1] sm:$0x11 pattern:$0x75316420]  ;;  %s3236_s1 = smov 112  }
  0x17   :  { %2944 = vmatprep.mubr.msk.f32.mxu1 %vm3232_vm0, %v3233_v11  ;;  %v704_v34 = vshrl.u32 %v703_v32, 7  ;;  %v699_v48 = vcombine.high %v2757_v36, %v2757_v36 }
  0x18   :  { %3118 = vmatpush3.bf16.msra.mxu0 %v3117_v37 }
  0x19   :  { %3124 = vmatpush3.bf16.msra.mxu1 %v3123_v38  ;;  %3125 = vmatprep.subr.bf16.mxu0 %v3231_v3  ;;  %v705_v35 = vsub.s32 %v702_v33, %v704_v34  ;;  %v716_v38 = vsub.s32 0, %v704_v34 }
  0x1a   :  { %3131 = vmatprep.subr.bf16.mxu1 %v3231_v3 }
  0x1b   :  { %2934 = vmatmul.mubr.msk.f32.vlgmr.msra.gmra.mrb[4].mxu0 %vm123_vm1, %v3415_v43  ;;  %v706_v37 = vrot.slane %v2757_v36, %v705_v35 }
  0x1c   :  { %2945 = vmatmul.mubr.msk.f32.vlgmr.msra.gmra.mrb[4].mxu1 %vm123_vm1, %v3415_v43  ;;  %3127 = vmatpush3.bf16.msra.mxu0 %v3126_v44 }
  0x1d   :  { %3133 = vmatpush3.bf16.msra.mxu1 %v3132_v45  ;;  %3128 = vmatprep.subr.bf16.mxu0 %v3231_v3  ;;  %v717_v39 = vrot.slane %v706_v37, %v716_v38 }
  0x1e   :  { %3134 = vmatprep.subr.bf16.mxu1 %v3231_v3  ;;  %2955 = vmatprep.mubr.msk.f32.mxu0 %vm3232_vm0, %v3233_v11 }
  0x1f   :  { %2966 = vmatprep.mubr.msk.f32.mxu1 %vm3232_vm0, %v3233_v11 }
  0x20   :  { %3130 = vmatpush3.bf16.msra.mxu0 %v3129_v50 }
  0x21   :  { %3136 = vmatpush3.bf16.msra.mxu1 %v3135_v51  ;;  %2969 = vmatprep.subr.mxu0 %v3233_v11 }
  0x22   :  { %2974 = vmatprep.subr.mxu1 %v3233_v11 }
  0x23   :  { %2956 = vmatmul.mubr.msk.f32.vlgmr.msra.gmra.mrb[6].mxu0 %vm123_vm1, %v3415_v43 }
  0x24   :  { %2967 = vmatmul.mubr.msk.f32.vlgmr.msra.gmra.mrb[6].mxu1 %vm123_vm1, %v3415_v43  ;;  %2971 = vmatprep.mubr.msk.f32.mxu0 %vm3232_vm0, %v3233_v11 }
  0x25   :  { %2976 = vmatprep.mubr.msk.f32.mxu1 %vm3232_vm0, %v3233_v11 }
  0xde   :  { %v193_v53 = vpop.f32.mrb[0].mxu0 }
  0xdf   :  { %v3457_v55 = vadd.f32 %v2741_v52, %v193_v53  ;;  %v2891_v56 = vpop.f32.mrb[1].mxu0  ;;  %v263_v57 = vpop.f32.mrb[0].mxu1  ;;  %v713_v53 = vrot.slane %v699_v48, %v705_v35 }
  0xe0   :  { %v2902_v58 = vpop.f32.mrb[1].mxu1  ;;  %v3459_v59 = vadd.f32 %v2742_v54, %v263_v57 }
  0xe1   :  { %725 = vrot.lane.b32.xlu0 %v3457_v55, %s3234_s16 }
  0xe5   :  { %803 = vrot.lane.b32.xlu0 %v3459_v59, %s3234_s16 }
  0xe6   :  { %v333_v61 = vpop.f32.mrb[2].mxu0 }
  0xe7   :  { %v3471_v63 = vadd.f32 %v2743_v60, %v333_v61  ;;  %v2913_v0 = vpop.f32.mrb[3].mxu0  ;;  %v403_v1 = vpop.f32.mrb[2].mxu1  ;;  %v721_v60 = vrot.slane %v713_v53, %v716_v38 }
  0xe8   :  { %v2924_v2 = vpop.f32.mrb[3].mxu1  ;;  %v3473_v3 = vadd.f32 %v2744_v62, %v403_v1 }
  0xe9   :  { %880 = vrot.lane.b32.xlu1 %v3471_v63, %s3234_s16 }
  0xed   :  { %957 = vrot.lane.b32.xlu1 %v3473_v3, %s3234_s16 }
  0xee   :  { %v476_v6 = vpop.f32.mrb[4].mxu0 }
  0xef   :  { %v3485_v7 = vadd.f32 %v2745_v4, %v476_v6  ;;  %v546_v8 = vpop.f32.mrb[4].mxu1  ;;  %v2935_v9 = vpop.f32.mrb[5].mxu0 }
  0xf0   :  { %v3487_v10 = vadd.f32 %v2746_v5, %v546_v8  ;;  %v2946_v12 = vpop.f32.mrb[5].mxu1 }
  0xf1   :  { %1034 = vrot.lane.b32.xlu0 %v3485_v7, %s3234_s16 }
  0xf2   :  { %1111 = vrot.lane.b32.xlu1 %v3487_v10, %s3234_s16 }
  0xf6   :  { %v616_v15 = vpop.f32.mrb[6].mxu0 }
  0xf7   :  { %v3499_v16 = vadd.f32 %v2747_v13, %v616_v15  ;;  %v686_v17 = vpop.f32.mrb[6].mxu1  ;;  %v2957_v19 = vpop.f32.mrb[7].mxu0 }
  0xf8   :  { %v3501_v20 = vadd.f32 %v2748_v14, %v686_v17  ;;  %v2968_v21 = vpop.f32.mrb[7].mxu1 }
  0xf9   :  { %1188 = vrot.lane.b32.xlu0 %v3499_v16, %s3234_s16 }
  0xfa   :  { %1265 = vrot.lane.b32.xlu1 %v3501_v20, %s3234_s16 }
 0x153   :  { %v726_v22 = vpop.permute.xlu0 %725 }
 0x154   :  { %2970 = vmatpush3.xpose.msk.msra.mxu0 %vm727_vm2, %v726_v22 }
 0x155   :  { %2979 = vmatprep.subr.mxu0 %v3233_v11 }
 0x157   :  { %2972 = vmatmul.mubr.msk.f32.vlgmr.msra.gmra.mrb[8].mxu0 %vm727_vm2, %v3457_v55  ;;  %v804_v23 = vpop.permute.xlu0 %803 }
 0x158   :  { %2975 = vmatpush3.xpose.msk.msra.mxu1 %vm727_vm2, %v804_v23  ;;  %2981 = vmatprep.mubr.msk.f32.mxu0 %vm3232_vm0, %v3233_v11 }
 0x159   :  { %2984 = vmatprep.subr.mxu1 %v3233_v11 }
 0x15b   :  { %2977 = vmatmul.mubr.msk.f32.vlgmr.msra.gmra.mrb[8].mxu1 %vm727_vm2, %v3459_v59  ;;  %v881_v24 = vpop.permute.xlu1 %880 }
 0x15c   :  { %2980 = vmatpush3.xpose.msk.msra.mxu0 %vm727_vm2, %v881_v24  ;;  %2986 = vmatprep.mubr.msk.f32.mxu1 %vm3232_vm0, %v3233_v11 }
 0x15d   :  { %2989 = vmatprep.subr.mxu0 %v3233_v11 }
 0x15f   :  { %2982 = vmatmul.mubr.msk.f32.vlgmr.msra.gmra.mrb[10].mxu0 %vm727_vm2, %v3471_v63  ;;  %v958_v25 = vpop.permute.xlu1 %957 }
 0x160   :  { %2985 = vmatpush3.xpose.msk.msra.mxu1 %vm727_vm2, %v958_v25  ;;  %2991 = vmatprep.mubr.msk.f32.mxu0 %vm3232_vm0, %v3233_v11 }
 0x161   :  { %2994 = vmatprep.subr.mxu1 %v3233_v11 }
 0x163   :  { %2987 = vmatmul.mubr.msk.f32.vlgmr.msra.gmra.mrb[10].mxu1 %vm727_vm2, %v3473_v3  ;;  %v1035_v26 = vpop.permute.xlu0 %1034 }
 0x164   :  { %v1112_v27 = vpop.permute.xlu1 %1111  ;;  %2990 = vmatpush3.xpose.msk.msra.mxu0 %vm727_vm2, %v1035_v26  ;;  %2996 = vmatprep.mubr.msk.f32.mxu1 %vm3232_vm0, %v3233_v11 }
 0x165   :  { %2995 = vmatpush3.xpose.msk.msra.mxu1 %vm727_vm2, %v1112_v27  ;;  %2999 = vmatprep.subr.mxu0 %v3233_v11 }
 0x166   :  { %3004 = vmatprep.subr.mxu1 %v3233_v11 }
 0x167   :  { %2992 = vmatmul.mubr.msk.f32.vlgmr.msra.gmra.mrb[12].mxu0 %vm727_vm2, %v3485_v7 }
 0x168   :  { %2997 = vmatmul.mubr.msk.f32.vlgmr.msra.gmra.mrb[12].mxu1 %vm727_vm2, %v3487_v10  ;;  %3001 = vmatprep.mubr.msk.f32.mxu0 %vm3232_vm0, %v3233_v11 }
 0x169   :  { %3006 = vmatprep.mubr.msk.f32.mxu1 %vm3232_vm0, %v3233_v11 }
 0x16b   :  { %v1189_v28 = vpop.permute.xlu0 %1188 }
 0x16c   :  { %v1266_v29 = vpop.permute.xlu1 %1265  ;;  %3000 = vmatpush3.xpose.msk.msra.mxu0 %vm727_vm2, %v1189_v28 }
 0x16d   :  { %3005 = vmatpush3.xpose.msk.msra.mxu1 %vm727_vm2, %v1266_v29  ;;  %3009 = vmatprep.subr.mxu0 %v3233_v11 }
 0x16e   :  { %3014 = vmatprep.subr.mxu1 %v3233_v11 }
 0x16f   :  { %3002 = vmatmul.mubr.msk.f32.vlgmr.msra.gmra.mrb[14].mxu0 %vm727_vm2, %v3499_v16 }
 0x170   :  { %3007 = vmatmul.mubr.msk.f32.vlgmr.msra.gmra.mrb[14].mxu1 %vm727_vm2, %v3501_v20  ;;  %3011 = vmatprep.mubr.msk.f32.mxu0 %vm3232_vm0, %v3233_v11 }
 0x171   :  { %3016 = vmatprep.mubr.msk.f32.mxu1 %vm3232_vm0, %v3233_v11 }
 0x22a   :  { %v798_v40 = vpop.f32.mrb[8].mxu0 }
 0x22b   :  { %v799_v41 = vadd.f32 %v798_v40, %v717_v39  ;;  %v2973_v42 = vpop.f32.mrb[9].mxu0 }
 0x22d   :  { %v1341_v44 = vsel %vm727_vm2, %v799_v41, -inf }
 0x22e   :  { %v875_v45 = vpop.f32.mrb[8].mxu1  ;;  %1342 = vmax.xlane.f32.xlu0 %v1341_v44 }
 0x22f   :  { %v876_v46 = vadd.f32 %v875_v45, %v717_v39  ;;  %v2978_v47 = vpop.f32.mrb[9].mxu1 }
 0x231   :  { %v1344_v49 = vsel %vm727_vm2, %v876_v46, -inf }
 0x232   :  { %1345 = vmax.xlane.f32.xlu1 %v1344_v49  ;;  %v952_v50 = vpop.f32.mrb[10].mxu0 }
 0x233   :  { %v953_v51 = vadd.f32 %v952_v50, %v717_v39  ;;  %v2983_v52 = vpop.f32.mrb[11].mxu0 }
 0x235   :  { %v1347_v54 = vsel %vm727_vm2, %v953_v51, -inf }
 0x236   :  { %v1029_v56 = vpop.f32.mrb[10].mxu1  ;;  %1348 = vmax.xlane.f32.xlu0 %v1347_v54 }
 0x237   :  { %v1030_v57 = vadd.f32 %v1029_v56, %v717_v39  ;;  %v2988_v58 = vpop.f32.mrb[11].mxu1 }
 0x239   :  { %v1350_v61 = vsel %vm727_vm2, %v1030_v57, -inf }
 0x23a   :  { %1351 = vmax.xlane.f32.xlu0 %v1350_v61  ;;  %v1106_v62 = vpop.f32.mrb[12].mxu0 }
 0x23b   :  { %v1183_v0 = vpop.f32.mrb[12].mxu1  ;;  %v1107_v1 = vadd.f32 %v1106_v62, %v721_v60  ;;  %v2993_v2 = vpop.f32.mrb[13].mxu0 }
 0x23c   :  { %v1184_v4 = vadd.f32 %v1183_v0, %v721_v60  ;;  %v2998_v5 = vpop.f32.mrb[13].mxu1 }
 0x23d   :  { %v1353_v6 = vsel %vm727_vm2, %v1107_v1, -inf }
 0x23e   :  { %v1356_v8 = vsel %vm727_vm2, %v1184_v4, -inf  ;;  %1354 = vmax.xlane.f32.xlu1 %v1353_v6 }
 0x23f   :  { %1357 = vmax.xlane.f32.xlu0 %v1356_v8 }
 0x242   :  { %v1260_v9 = vpop.f32.mrb[14].mxu0 }
 0x243   :  { %v1261_v12 = vadd.f32 %v1260_v9, %v721_v60  ;;  %v1337_v13 = vpop.f32.mrb[14].mxu1  ;;  %v3003_v14 = vpop.f32.mrb[15].mxu0 }
 0x244   :  { %v1338_v15 = vadd.f32 %v1337_v13, %v721_v60  ;;  %v3008_v17 = vpop.f32.mrb[15].mxu1 }
 0x245   :  { %v1359_v19 = vsel %vm727_vm2, %v1261_v12, -inf }
 0x246   :  { %v1362_v21 = vsel %vm727_vm2, %v1338_v15, -inf  ;;  %1360 = vmax.xlane.f32.xlu1 %v1359_v19 }
 0x247   :  { %1363 = vmax.xlane.f32.xlu0 %v1362_v21 }
 0x257   :  { %1437 = vrot.lane.b32.xlu1 %v3457_v55, %s3236_s1 }
 0x25b   :  { %1589 = vrot.lane.b32.xlu1 %v3471_v63, %s3236_s1 }
 0x25d   :  { %1513 = vrot.lane.b32.xlu0 %v3459_v59, %s3236_s1 }
 0x25f   :  { %1665 = vrot.lane.b32.xlu1 %v3473_v3, %s3236_s1 }
 0x261   :  { %1741 = vrot.lane.b32.xlu0 %v3485_v7, %s3236_s1 }
 0x263   :  { %1817 = vrot.lane.b32.xlu1 %v3487_v10, %s3236_s1 }
 0x2bb   :  { %v1343_v22 = vpop.xlane.xlu0 %1342 }
 0x2bc   :  { %v1365_v23 = vsub.f32 %v799_v41, %v1343_v22 }
 0x2be   :  { %v1373_v24 = vmul.f32 1.442695, %v1365_v23 }
 0x2bf   :  { %v1346_v25 = vpop.xlane.xlu1 %1345 }
 0x2c0   :  { %3147 = vpow2.f32 %v1373_v24  ;;  %v1366_v55 = vsub.f32 %v876_v46, %v1346_v25 }
 0x2c2   :  { %v1375_v26 = vmul.f32 1.442695, %v1366_v55 }
 0x2c3   :  { %v1349_v63 = vpop.xlane.xlu0 %1348 }
 0x2c4   :  { %3149 = vpow2.f32 %v1375_v26  ;;  %v1367_v27 = vsub.f32 %v953_v51, %v1349_v63 }
 0x2c6   :  { %v1377_v59 = vmul.f32 1.442695, %v1367_v27 }
 0x2c7   :  { %v1352_v28 = vpop.xlane.xlu0 %1351 }
 0x2c8   :  { %3151 = vpow2.f32 %v1377_v59  ;;  %v1368_v3 = vsub.f32 %v1030_v57, %v1352_v28 }
 0x2ca   :  { %v3148_v29 = vpop.eup %3147  ;;  %v1379_v30 = vmul.f32 1.442695, %v1368_v3 }
 0x2cb   :  { %v1355_v7 = vpop.xlane.xlu1 %1354  ;;  %v1389_v31 = vsel %vm727_vm2, %v3148_v29, 0.0 }
 0x2cc   :  { %3153 = vpow2.f32 %v1379_v30  ;;  %v1358_v10 = vpop.xlane.xlu0 %1357  ;;  %v1369_v32 = vsub.f32 %v1107_v1, %v1355_v7  ;;  %1390 = vadd.xlane.f32.xlu1 %v1389_v31  ;;  %v2046_v30 = vld [vmem:[%s3763_s4 + $0x8] sm:$0xff]  ;;  %v2047_v7 = vld [vmem:[%s3763_s4 + $0x10] sm:$0xff] }
 0x2cd   :  { %v1370_v33 = vsub.f32 %v1184_v4, %v1358_v10 }
 0x2ce   :  { %v3150_v34 = vpop.eup %3149  ;;  %v1381_v35 = vmul.f32 1.442695, %v1369_v32  ;;  %v2048_v32 = vld [vmem:[%s3763_s4 + $0x18] sm:$0xff] }
 0x2cf   :  { %v1383_v36 = vmul.f32 1.442695, %v1370_v33  ;;  %v1392_v37 = vsel %vm727_vm2, %v3150_v34, 0.0 }
 0x2d0   :  { %3155 = vpow2.f32 %v1381_v35  ;;  %1393 = vadd.xlane.f32.xlu0 %v1392_v37  ;;  %v2049_v35 = vld [vmem:[%s3763_s4 + $0x20] sm:$0xff] }
 0x2d1   :  { %3157 = vpow2.f32 %v1383_v36 }
 0x2d2   :  { %v3580_v38 = vpop.eup %3151 }
 0x2d3   :  { %v1361_v39 = vpop.xlane.xlu1 %1360  ;;  %v1395_v40 = vsel %vm727_vm2, %v3580_v38, 0.0 }
 0x2d4   :  { %v1364_v41 = vpop.xlane.xlu0 %1363  ;;  %v1371_v42 = vsub.f32 %v1261_v12, %v1361_v39  ;;  %1396 = vadd.xlane.f32.xlu1 %v1395_v40 }
 0x2d5   :  { %v1372_v44 = vsub.f32 %v1338_v15, %v1364_v41  ;;  %v2051_v41 = vld [vmem:[%s3763_s4 + $0x30] sm:$0xff] }
 0x2d6   :  { %v3584_v45 = vpop.eup %3153  ;;  %v1385_v46 = vmul.f32 1.442695, %v1371_v42 }
 0x2d7   :  { %v1387_v47 = vmul.f32 1.442695, %v1372_v44  ;;  %v1438_v48 = vpop.permute.xlu1 %1437  ;;  %v1398_v49 = vsel %vm727_vm2, %v3584_v45, 0.0  ;;  %v2052_v44 = vld [vmem:[%s3763_s4 + $0x38] sm:$0xff] }
 0x2d8   :  { %3159 = vpow2.f32 %v1385_v46  ;;  %v1514_v50 = vpop.permute.xlu0 %1513  ;;  %1399 = vadd.xlane.f32.xlu0 %v1398_v49  ;;  %3010 = vmatpush3.msra.mxu0 %v1438_v48 }
 0x2d9   :  { %3161 = vpow2.f32 %v1387_v47  ;;  %3015 = vmatpush3.msra.mxu1 %v1514_v50  ;;  %3019 = vmatprep.subr.mxu0 %v3233_v11 }
 0x2da   :  { %v3589_v51 = vpop.eup %3155  ;;  %3024 = vmatprep.subr.mxu1 %v3233_v11 }
 0x2db   :  { %v3592_v52 = vpop.eup %3157  ;;  %v1401_v53 = vsel %vm727_vm2, %v3589_v51, 0.0  ;;  %v1590_v61 = vpop.permute.xlu1 %1589 }
 0x2dc   :  { %v1404_v54 = vsel %vm727_vm2, %v3592_v52, 0.0  ;;  %1402 = vadd.xlane.f32.xlu1 %v1401_v53  ;;  %v1742_v1 = vpop.permute.xlu0 %1741 }
 0x2dd   :  { %1405 = vadd.xlane.f32.xlu0 %v1404_v54 }
 0x2df   :  { %v1666_v62 = vpop.permute.xlu1 %1665 }
 0x2e2   :  { %v3598_v56 = vpop.eup %3159 }
 0x2e3   :  { %v3600_v57 = vpop.eup %3161  ;;  %v1407_v58 = vsel %vm727_vm2, %v3598_v56, 0.0  ;;  %v1818_v0 = vpop.permute.xlu1 %1817 }
 0x2e4   :  { %v1410_v60 = vsel %vm727_vm2, %v3600_v57, 0.0  ;;  %1408 = vadd.xlane.f32.xlu1 %v1407_v58 }
 0x2e5   :  { %1411 = vadd.xlane.f32.xlu0 %v1410_v60 }
 0x2f5   :  { %1969 = vrot.lane.b32.xlu1 %v3501_v20, %s3236_s1 }
 0x2fb   :  { %1893 = vrot.lane.b32.xlu0 %v3499_v16, %s3236_s1 }
 0x359   :  { %v1391_v2 = vpop.xlane.xlu1 %1390 }
 0x35a   :  { %3163 = vrcp.f32 %v1391_v2 }
 0x35d   :  { %v1394_v4 = vpop.xlane.xlu0 %1393 }
 0x35e   :  { %3165 = vrcp.f32 %v1394_v4  ;;  %v2790_v4 = vld [vmem:[%s3764_s5] ss:$0 sm:$0xff]  ;;  %s3237_s5 = smov [#allocation4]  }
 0x35f   :  { %s2726_s24 = sshll.u32 %s3237_s5, 4  ;;  %s2727_s24 = int_to_ptr.vmem [resolvable:$true] %s2726_s24 }
 0x360   :  { %s3183_s25 = scalar_lea.vmem %s2727_s24, 1024  ;;  %p3188_p1 = scmp.lt.s32.totalorder %s2727_s24, %s2727_s24 }
 0x361   :  { %v1397_v5 = vpop.xlane.xlu1 %1396  ;;  %p3184_p0 = scmp.ne.s32.totalorder %s2727_s24, %s3183_s25  ;;  %p3189_p2 = scmp.lt.s32.totalorder %s3183_s25, %s3183_s25 }
 0x362   :  { %3167 = vrcp.f32 %v1397_v5 }
 0x363   :  { %p3190_p3 = por %p3189_p2, %p3188_p1 }
 0x364   :  { %v3164_v6 = vpop.eup %3163 }
 0x365   :  { %v1421_v8 = vmul.f32 %v3164_v6, %v3148_v29  ;;  %v1400_v9 = vpop.xlane.xlu0 %1399  ;;  %v2045_v29 = vld [vmem:[%s3763_s4] sm:$0xff]  ;;  %p3191_p4 = pnand %p3190_p3, %p3184_p0 }
 0x366   :  { %3169 = vrcp.f32 %v1400_v9 }
 0x367   :  { %1429 = vst.msk [vmem:[#allocation4] sm:$0xff] %vm727_vm2, %v1421_v8  ;;  %3012 = vmatmul.mubr.msk.f32.vlgmr.msra.gmra.mrb[16].mxu0 %vm727_vm2, %v1421_v8 }
 0x368   :  { %v3166_v20 = vpop.eup %3165  ;;  %3020 = vmatpush3.msra.mxu0 %v1590_v61  ;;  %3021 = vmatprep.mubr.msk.f32.mxu0 %vm3232_vm0, %v3233_v11 }
 0x369   :  { %v1422_v16 = vmul.f32 %v3166_v20, %v3150_v34  ;;  %v1403_v12 = vpop.xlane.xlu1 %1402  ;;  %3029 = vmatprep.subr.mxu0 %v3233_v11 }
 0x36a   :  { %v1406_v13 = vpop.xlane.xlu0 %1405  ;;  %3171 = vrcp.f32 %v1403_v12 }
 0x36b   :  { %1430 = vst.msk [vmem:[#allocation4 + $0x8] sm:$0xff] %vm727_vm2, %v1422_v16  ;;  %3173 = vrcp.f32 %v1406_v13  ;;  %3017 = vmatmul.mubr.msk.f32.vlgmr.msra.gmra.mrb[16].mxu1 %vm727_vm2, %v1422_v16 }
 0x36c   :  { %v3168_v14 = vpop.eup %3167  ;;  %3025 = vmatpush3.msra.mxu1 %v1666_v62  ;;  %3026 = vmatprep.mubr.msk.f32.mxu1 %vm3232_vm0, %v3233_v11 }
 0x36d   :  { %v1423_v15 = vmul.f32 %v3168_v14, %v3580_v38  ;;  %3034 = vmatprep.subr.mxu1 %v3233_v11  ;;  %v2050_v38 = vld [vmem:[%s3763_s4 + $0x28] sm:$0xff] }
 0x36f   :  { %1431 = vst.msk [vmem:[#allocation4 + $0x10] sm:$0xff] %vm727_vm2, %v1423_v15  ;;  %3022 = vmatmul.mubr.msk.f32.vlgmr.msra.gmra.mrb[18].mxu0 %vm727_vm2, %v1423_v15 }
 0x370   :  { %v3170_v17 = vpop.eup %3169  ;;  %3030 = vmatpush3.msra.mxu0 %v1742_v1  ;;  %3031 = vmatprep.mubr.msk.f32.mxu0 %vm3232_vm0, %v3233_v11 }
 0x371   :  { %v1424_v19 = vmul.f32 %v3170_v17, %v3584_v45  ;;  %v1409_v21 = vpop.xlane.xlu1 %1408  ;;  %3039 = vmatprep.subr.mxu0 %v3233_v11 }
 0x372   :  { %v1412_v22 = vpop.xlane.xlu0 %1411  ;;  %3175 = vrcp.f32 %v1409_v21 }
 0x373   :  { %1432 = vst.msk [vmem:[#allocation4 + $0x18] sm:$0xff] %vm727_vm2, %v1424_v19  ;;  %3177 = vrcp.f32 %v1412_v22  ;;  %3027 = vmatmul.mubr.msk.f32.vlgmr.msra.gmra.mrb[18].mxu1 %vm727_vm2, %v1424_v19 }
 0x374   :  { %v3172_v23 = vpop.eup %3171  ;;  %3035 = vmatpush3.msra.mxu1 %v1818_v0  ;;  %3036 = vmatprep.mubr.msk.f32.mxu1 %vm3232_vm0, %v3233_v11 }
 0x375   :  { %v3174_v24 = vpop.eup %3173  ;;  %v1425_v25 = vmul.f32 %v3172_v23, %v3589_v51  ;;  %3044 = vmatprep.subr.mxu1 %v3233_v11  ;;  %v1970_v63 = vpop.permute.xlu1 %1969 }
 0x376   :  { %v1426_v55 = vmul.f32 %v3174_v24, %v3592_v52  ;;  %v1894_v26 = vpop.permute.xlu0 %1893 }
 0x377   :  { %1433 = vst.msk [vmem:[#allocation4 + $0x20] sm:$0xff] %vm727_vm2, %v1425_v25  ;;  %3032 = vmatmul.mubr.msk.f32.vlgmr.msra.gmra.mrb[20].mxu0 %vm727_vm2, %v1425_v25 }
 0x378   :  { %1434 = vst.msk [vmem:[#allocation4 + $0x28] sm:$0xff] %vm727_vm2, %v1426_v55  ;;  %3037 = vmatmul.mubr.msk.f32.vlgmr.msra.gmra.mrb[20].mxu1 %vm727_vm2, %v1426_v55  ;;  %3040 = vmatpush3.msra.mxu0 %v1894_v26 }
 0x379   :  { %3045 = vmatpush3.msra.mxu1 %v1970_v63  ;;  %3041 = vmatprep.mubr.msk.f32.mxu0 %vm3232_vm0, %v3233_v11 }
 0x37a   :  { %3046 = vmatprep.mubr.msk.f32.mxu1 %vm3232_vm0, %v3233_v11  ;;  %3049 = vmatprep.subr.mxu0 %v3233_v11 }
 0x37b   :  { %3054 = vmatprep.subr.mxu1 %v3233_v11 }
 0x37c   :  { %v3176_v27 = vpop.eup %3175 }
 0x37d   :  { %v3178_v59 = vpop.eup %3177  ;;  %v1427_v28 = vmul.f32 %v3176_v27, %v3598_v56 }
 0x37e   :  { %v1428_v3 = vmul.f32 %v3178_v59, %v3600_v57 }
 0x37f   :  { %1435 = vst.msk [vmem:[#allocation4 + $0x30] sm:$0xff] %vm727_vm2, %v1427_v28  ;;  %3042 = vmatmul.mubr.msk.f32.vlgmr.msra.gmra.mrb[22].mxu0 %vm727_vm2, %v1427_v28 }
 0x380   :  { %1436 = vst.msk [vmem:[#allocation4 + $0x38] sm:$0xff] %vm727_vm2, %v1428_v3  ;;  %3047 = vmatmul.mubr.msk.f32.vlgmr.msra.gmra.mrb[22].mxu1 %vm727_vm2, %v1428_v3  ;;  %3051 = vmatprep.mubr.msk.f32.mxu0 %vm3232_vm0, %v3233_v11 }
 0x381   :  { %3056 = vmatprep.mubr.msk.f32.mxu1 %vm3232_vm0, %v3233_v11  ;;  %3050 = vmatpush3.msra.mxu0 %v2045_v29 }
 0x382   :  { %3059 = vmatprep.subr.mxu0 %v3233_v11  ;;  %3055 = vmatpush3.msra.mxu1 %v2046_v30 }
 0x383   :  { %3064 = vmatprep.subr.mxu1 %v3233_v11 }
 0x43a   :  { %v1509_v31 = vpop.f32.mrb[16].mxu0 }
 0x43b   :  { %v3013_v10 = vpop.f32.mrb[17].mxu0  ;;  %3052 = vmatmul.mubr.msk.f32.vlgmr.msra.gmra.mrb[24].mxu0 %vm727_vm2, %v1509_v31 }
 0x43c   :  { %3060 = vmatpush3.msra.mxu0 %v2047_v7  ;;  %3061 = vmatprep.mubr.msk.f32.mxu0 %vm3232_vm0, %v3233_v11 }
 0x43d   :  { %3069 = vmatprep.subr.mxu0 %v3233_v11 }
 0x43e   :  { %v1585_v33 = vpop.f32.mrb[16].mxu1 }
 0x43f   :  { %v3018_v34 = vpop.f32.mrb[17].mxu1  ;;  %3057 = vmatmul.mubr.msk.f32.vlgmr.msra.gmra.mrb[24].mxu1 %vm727_vm2, %v1585_v33 }
 0x440   :  { %3065 = vmatpush3.msra.mxu1 %v2048_v32  ;;  %3066 = vmatprep.mubr.msk.f32.mxu1 %vm3232_vm0, %v3233_v11 }
 0x441   :  { %3074 = vmatprep.subr.mxu1 %v3233_v11 }
 0x442   :  { %v1661_v36 = vpop.f32.mrb[18].mxu0 }
 0x443   :  { %v3023_v37 = vpop.f32.mrb[19].mxu0  ;;  %3062 = vmatmul.mubr.msk.f32.vlgmr.msra.gmra.mrb[26].mxu0 %vm727_vm2, %v1661_v36 }
 0x444   :  { %3070 = vmatpush3.msra.mxu0 %v2049_v35  ;;  %3071 = vmatprep.mubr.msk.f32.mxu0 %vm3232_vm0, %v3233_v11 }
 0x445   :  { %3079 = vmatprep.subr.mxu0 %v3233_v11 }
 0x446   :  { %v1737_v39 = vpop.f32.mrb[18].mxu1 }
 0x447   :  { %v3028_v40 = vpop.f32.mrb[19].mxu1  ;;  %3067 = vmatmul.mubr.msk.f32.vlgmr.msra.gmra.mrb[26].mxu1 %vm727_vm2, %v1737_v39 }
 0x448   :  { %3075 = vmatpush3.msra.mxu1 %v2050_v38  ;;  %3076 = vmatprep.mubr.msk.f32.mxu1 %vm3232_vm0, %v3233_v11 }
 0x449   :  { %3084 = vmatprep.subr.mxu1 %v3233_v11 }
 0x44a   :  { %v1813_v42 = vpop.f32.mrb[20].mxu0 }
 0x44b   :  { %v1889_v45 = vpop.f32.mrb[20].mxu1  ;;  %v3033_v46 = vpop.f32.mrb[21].mxu0  ;;  %3072 = vmatmul.mubr.msk.f32.vlgmr.msra.gmra.mrb[28].mxu0 %vm727_vm2, %v1813_v42 }
 0x44c   :  { %v3038_v47 = vpop.f32.mrb[21].mxu1  ;;  %3077 = vmatmul.mubr.msk.f32.vlgmr.msra.gmra.mrb[28].mxu1 %vm727_vm2, %v1889_v45  ;;  %3080 = vmatpush3.msra.mxu0 %v2051_v41 }
 0x44d   :  { %3081 = vmatprep.mubr.msk.f32.mxu0 %vm3232_vm0, %v3233_v11  ;;  %3085 = vmatpush3.msra.mxu1 %v2052_v44 }
 0x44e   :  { %3086 = vmatprep.mubr.msk.f32.mxu1 %vm3232_vm0, %v3233_v11 }
 0x452   :  { %v1965_v48 = vpop.f32.mrb[22].mxu0 }
 0x453   :  { %v2041_v49 = vpop.f32.mrb[22].mxu1  ;;  %v3043_v50 = vpop.f32.mrb[23].mxu0  ;;  %3082 = vmatmul.mubr.msk.f32.vlgmr.msra.gmra.mrb[30].mxu0 %vm727_vm2, %v1965_v48 }
 0x454   :  { %v3048_v51 = vpop.f32.mrb[23].mxu1  ;;  %3087 = vmatmul.mubr.msk.f32.vlgmr.msra.gmra.mrb[30].mxu1 %vm727_vm2, %v2041_v49 }
 0x50e   :  { %v2122_v52 = vpop.f32.mrb[24].mxu0 }
 0x50f   :  { %v3053_v53 = vpop.f32.mrb[25].mxu0  ;;  %v2637_v56 = vsel %vm123_vm1, %v2122_v52, 0.0 }
 0x512   :  { %v2195_v54 = vpop.f32.mrb[24].mxu1 }
 0x513   :  { %v2638_v57 = vsel %vm123_vm1, %v2195_v54, 0.0  ;;  %v3058_v58 = vpop.f32.mrb[25].mxu1 }
 0x514   :  { %v2639_v60 = vadd.f32 %v2638_v57, %v2637_v56 }
 0x516   :  { %v2268_v61 = vpop.f32.mrb[26].mxu0 }
 0x517   :  { %v2640_v11 = vsel %vm123_vm1, %v2268_v61, 0.0  ;;  %v3063_v62 = vpop.f32.mrb[27].mxu0 }
 0x518   :  { %v2641_v0 = vadd.f32 %v2640_v11, %v2639_v60 }
 0x51a   :  { %v2341_v1 = vpop.f32.mrb[26].mxu1 }
 0x51b   :  { %v2642_v2 = vsel %vm123_vm1, %v2341_v1, 0.0  ;;  %v3068_v5 = vpop.f32.mrb[27].mxu1 }
 0x51c   :  { %v2643_v6 = vadd.f32 %v2642_v2, %v2641_v0 }
 0x51e   :  { %v2658_v8 = vadd.f32 %v2790_v4, %v2643_v6  ;;  %v2414_v9 = vpop.f32.mrb[28].mxu0 }
 0x51f   :  { %v2644_v20 = vsel %vm123_vm1, %v2414_v9, 0.0  ;;  %v2487_v16 = vpop.f32.mrb[28].mxu1  ;;  %v3073_v12 = vpop.f32.mrb[29].mxu0 }
 0x520   :  { %v2645_v13 = vsel %vm123_vm1, %v2487_v16, 0.0  ;;  %v3078_v14 = vpop.f32.mrb[29].mxu1  ;;  %v2660_v15 = vadd.f32 %v2658_v8, %v3338_v18 }
 0x521   :  { %v2646_v17 = vadd.f32 %v2645_v13, %v2644_v20 }
 0x522   :  { %v2664_v19 = vsel %vm123_vm1, %v2660_v15, 0.0 }
 0x523   :  { %2665 = vadd.xlane.f32.xlu0 %v2664_v19 }
 0x526   :  { %v2560_v21 = vpop.f32.mrb[30].mxu0 }
 0x527   :  { %v2647_v22 = vsel %vm123_vm1, %v2560_v21, 0.0  ;;  %v2633_v23 = vpop.f32.mrb[30].mxu1  ;;  %v3083_v24 = vpop.f32.mrb[31].mxu0 }
 0x528   :  { %v2648_v25 = vadd.f32 %v2647_v22, %v2646_v17  ;;  %v3088_v55 = vpop.f32.mrb[31].mxu1  ;;  %v2649_v26 = vsel %vm123_vm1, %v2633_v23, 0.0 }
 0x52a   :  { %v2650_v63 = vadd.f32 %v2649_v26, %v2648_v25 }
 0x52c   :  { %v2659_v27 = vadd.f32 %v2790_v4, %v2650_v63 }
 0x52e   :  { %v2661_v59 = vadd.f32 %v2659_v27, %v3415_v43 }
 0x530   :  { %v2667_v28 = vsel %vm123_vm1, %v2661_v59, 0.0 }
 0x531   :  { %2668 = vadd.xlane.f32.xlu1 %v2667_v28 }
 0x5b0   :  { %v2666_v18 = vpop.xlane.xlu0 %2665 }
 0x5b1   :  { %v2671_v3 = vmul.f32 0.03125, %v2666_v18 }
 0x5b3   :  { %v2673_v29 = vsub.f32 %v2660_v15, %v2671_v3 }
 0x5b5   :  { %v2675_v30 = vmul.f32 %v2673_v29, %v2673_v29 }
 0x5b7   :  { %v2677_v7 = vsel %vm123_vm1, %v2675_v30, 0.0 }
 0x5b8   :  { %2678 = vadd.xlane.f32.xlu0 %v2677_v7 }
 0x5be   :  { %v2669_v31 = vpop.xlane.xlu1 %2668 }
 0x5bf   :  { %v2672_v10 = vmul.f32 0.03125, %v2669_v31 }
 0x5c1   :  { %v2674_v32 = vsub.f32 %v2661_v59, %v2672_v10 }
 0x5c3   :  { %v2676_v33 = vmul.f32 %v2674_v32, %v2674_v32 }
 0x5c5   :  { %v2680_v34 = vsel %vm123_vm1, %v2676_v33, 0.0 }
 0x5c6   :  { %2681 = vadd.xlane.f32.xlu0 %v2680_v34 }
 0x5c7   :  { %3194 = shalt.err (!%p3191_p4)
}
 0x5c8   :  { %s3195_s28 = scalar_lea.hbm %s3768_s9, 1024 }
 0x5c9   :  { %p3196_p5 = scmp.ne.s32.totalorder %s3768_s9, %s3195_s28  ;;  %p3199_p6 = scmp.lt.u32.totalorder %s3195_s28, %s3768_s9 }
 0x5cb   :  { %p3201_p7 = pnand %p3199_p6, %p3196_p5 }
 0x5cd   :  { %3204 = shalt.err (!%p3201_p7)
}
 0x5ce   :  { %s3238_s10 = smov 128   ;;  %s3239_s11 = smov 8   ;;  %v2791_v40 = vld [vmem:[%s3765_s6] ss:$0 sm:$0xff] }
 0x5cf   :  { %2732 = dma.vmem_to_hbm [thread:$0]  %s2727_s24, 1024, %s3768_s9, [#allocation5], %s3238_s10, %s3238_s10, %s3239_s11  }
 0x5d0   :  { %v2792_v44 = vld [vmem:[%s3766_s7] ss:$0 sm:$0xff]  ;;  %s3240_s9 = smov [#allocation2]  }
 0x5d1   :  { %s2714_s16 = sshll.u32 %s3240_s9, 4  ;;  %s2715_s16 = int_to_ptr.vmem [resolvable:$true] %s2714_s16 }
 0x5d2   :  { %s3205_s6 = scalar_lea.vmem %s2715_s16, 256  ;;  %p3210_p9 = scmp.lt.s32.totalorder %s2715_s16, %s2715_s16 }
 0x5d3   :  { %p3206_p8 = scmp.ne.s32.totalorder %s2715_s16, %s3205_s6  ;;  %p3211_p10 = scmp.lt.s32.totalorder %s3205_s6, %s3205_s6 }
 0x5d5   :  { %p3212_p11 = por %p3211_p10, %p3210_p9 }
 0x5d7   :  { %p3213_p12 = pnand %p3212_p11, %p3206_p8 }
 0x645   :  { %v2679_v43 = vpop.xlane.xlu0 %2678 }
 0x646   :  { %v2683_v35 = vmul.f32 0.03125, %v2679_v43 }
 0x648   :  { %v2685_v36 = vadd.f32 1e-12, %v2683_v35 }
 0x64a   :  { %3179 = vrsqrt.f32 %v2685_v36 }
 0x653   :  { %v2682_v37 = vpop.xlane.xlu0 %2681 }
 0x654   :  { %v3180_v38 = vpop.eup %3179  ;;  %v2684_v39 = vmul.f32 0.03125, %v2682_v37 }
 0x655   :  { %v2689_v41 = vmul.f32 %v3180_v38, %v2673_v29 }
 0x656   :  { %v2686_v42 = vadd.f32 1e-12, %v2684_v39 }
 0x657   :  { %v2697_v45 = vmul.f32 %v2791_v40, %v2689_v41 }
 0x658   :  { %3181 = vrsqrt.f32 %v2686_v42 }
 0x659   :  { %v2705_v46 = vadd.f32 %v2792_v44, %v2697_v45 }
 0x65b   :  { %2707 = vst.msk [vmem:[#allocation2] sm:$0xff] %vm123_vm1, %v2705_v46 }
 0x662   :  { %v3182_v47 = vpop.eup %3181 }
 0x663   :  { %v2690_v48 = vmul.f32 %v3182_v47, %v2674_v32 }
 0x665   :  { %v2698_v49 = vmul.f32 %v2791_v40, %v2690_v48 }
 0x667   :  { %v2706_v50 = vadd.f32 %v2792_v44, %v2698_v49 }
 0x669   :  { %2708 = vst.msk [vmem:[#allocation2 + $0x8] sm:$0xff] %vm123_vm1, %v2706_v50 }
 0x66a   :  { %3216 = shalt.err (!%p3213_p12)
}
 0x66b   :  { %s3217_s18 = scalar_lea.hbm %s3767_s8, 256 }
 0x66c   :  { %p3218_p13 = scmp.ne.s32.totalorder %s3767_s8, %s3217_s18  ;;  %p3221_p0 = scmp.lt.u32.totalorder %s3217_s18, %s3767_s8 }
 0x66e   :  { %p3223_p1 = pnand %p3221_p0, %p3218_p13 }
 0x670   :  { %3226 = shalt.err (!%p3223_p1)
}
 0x671   :  { %2720 = dma.vmem_to_hbm [thread:$0]  %s2715_s16, 256, %s3767_s8, [#allocation3], %s3238_s10, %s3238_s10, %s3239_s11  }
 0x672   :  { %3227 = dma.done.wait [#allocation3], 256  }
 0x673   :  { %3228 = vsyncadd [#allocation3], 4294967040 }
 0x674   :  { %3229 = dma.done.wait [#allocation5], 1024  }
 0x675   :  { %3230 = vsyncadd [#allocation5], 4294966272 }
 0x676   :  { %2739 = vsyncpa [#allocation3], 1 }
 0x677   :  { %2740 = vsyncpa [#allocation5], 1 }

</bundles_post_ra>
